<compile_context>
chip_gen: v7x
topology: tpu7x:2x2x1
jax: 0.10.0
libtpu: 0.0.40
codegen_flags: <defaults>
</compile_context>

<pallas_src>
import functools
from typing import NamedTuple

import jax
import jax.numpy as jnp
from jax.experimental import pallas as pl
from jax.experimental.pallas import tpu as pltpu  # noqa: F401  (kept for optional CompilerParams/interpret use)


LANE = 128      # TPU lane width
SUBLANE = 8     # TPU sublane count (f32)


def _round_up(x, m):
    return ((x + m - 1) // m) * m


class EncoderContext(NamedTuple):
    decoder_hidden: jax.Array
    decoder_input_concat: jax.Array
    decoder_hidden_concat: jax.Array


# -----------------------------------------------------------------------------
# Single fused kernel: counter encoder + embedding gather + GRU recurrence
# -----------------------------------------------------------------------------
def _fused_encoder_kernel(counters_ref, cw_ref, cb_ref,
                          tok_ref, emb_ref,
                          wi_ref, bi_ref, wh_ref, bhn_ref, len_ref,
                          counter_out_ref, h_out_ref, *, hidden):
    H = hidden
    BP = h_out_ref.shape[0]            # sublane-padded batch (8)
    TB = tok_ref.shape[0]              # T * BP (time-major)
    T = TB // BP
    VP = emb_ref.shape[0]              # lane-padded vocab

    # ---- BlockRegionCountersEncoder: one MXU matmul + bias + ReLU.
    #      Weight stored bf16 (DMA halved); activations/accumulation f32.
    c = jnp.dot(counters_ref[...], cw_ref[...], preferred_element_type=jnp.float32)
    counter_out_ref[...] = jnp.maximum(c + cb_ref[...], 0.0)
    # TODO(synk): counter_embedding_layer_nonlinearity assumed ReLU; global-counters
    # branch / separate encoders / bypass options not implemented.

    # ---- Embedding lookup as a one-hot matmul. One-hot entries are 0/1 and the
    #      table is already bf16, so bf16 MXU inputs here are numerically exact.
    onehot = (tok_ref[...] ==
              jax.lax.broadcasted_iota(jnp.int32, (TB, VP), 1)).astype(jnp.bfloat16)
    x = jnp.dot(onehot, emb_ref[...], preferred_element_type=jnp.float32)       # (T*BP, E) f32

    # ---- Hoisted fused input projection for ALL timesteps, biases pre-folded.
    #      Compact gate layout: columns [0:H)=r, [H:2H)=z, [2H:3H)=n, rest zero.
    #      x holds exact bf16 table rows, so the bf16 cast below is exact.
    xi = jnp.dot(x.astype(jnp.bfloat16), wi_ref[...],
                 preferred_element_type=jnp.float32) + bi_ref[...]              # (T*BP, 128)

    bhn = bhn_ref[...]                                        # (1, H) f32
    lens_b = jnp.broadcast_to(len_ref[...], (BP, H))          # hoisted broadcast

    # ---- Fully-unrolled GRU recurrence (T small & static). h kept at its true
    #      width (BP, H); the per-step hidden-gate RHS is a single 128-lane MXU
    #      tile, re-read from VMEM each step instead of being held live across
    #      the unrolled loop (keeps vreg pressure low).
    h = jnp.zeros((BP, H), jnp.float32)
    for t in range(T):
        xi_t = xi[t * BP:(t + 1) * BP, :]                                        # (BP, 128) full tile
        g = jnp.dot(h, wh_ref[...], preferred_element_type=jnp.float32)          # (BP, 128)
        pre = xi_t + g
        r = jax.nn.sigmoid(pre[:, 0:H])
        z = jax.nn.sigmoid(pre[:, H:2 * H])
        n = jnp.tanh(xi_t[:, 2 * H:3 * H] + r * (g[:, 2 * H:3 * H] + bhn))
        h_new = (1.0 - z) * n + z * h
        # pack_padded_sequence semantics: freeze the hidden state once t >= length[b]
        h = jnp.where(lens_b > t, h_new, h)
    h_out_ref[...] = h


def _run_fused_encoder(params, counters_p, tokens_tm, lengths2d, BP, H):
    return pl.pallas_call(
        functools.partial(_fused_encoder_kernel, hidden=H),
        out_shape=(jax.ShapeDtypeStruct((BP, LANE), jnp.float32),   # counter encoding (lane-padded)
                   jax.ShapeDtypeStruct((BP, H), jnp.float32)),     # final GRU hidden
    )(counters_p,
      params["counter_w_p"], params["counter_b_p"],
      tokens_tm, params["emb_table_p"],
      params["wi_pack"], params["bi_pack"], params["wh_pack"], params["bhn_p"],
      lengths2d)


# -----------------------------------------------------------------------------
# Forward pass (wrapper): only trivial layout plumbing outside the kernel
# -----------------------------------------------------------------------------
def forward(params, counters, tokens, lengths):
    B, T = tokens.shape
    counter_emb = params["counter_emb"]
    H = params["hidden"]
    DP = params["counter_w_p"].shape[0]          # lane-aligned counter feature dim

    BP = _round_up(max(B, SUBLANE), SUBLANE)     # pad batch to a full sublane tile

    counters_p = jnp.zeros((BP, DP), jnp.float32)
    counters_p = counters_p.at[:B, :counters.shape[1]].set(counters.astype(jnp.float32))

    tokens_p = jnp.zeros((BP, T), jnp.int32).at[:B].set(tokens.astype(jnp.int32))
    tokens_tm = jnp.transpose(tokens_p).reshape(T * BP, 1)          # time-major flatten
    lengths2d = jnp.zeros((BP, 1), jnp.int32).at[:B, 0].set(lengths.astype(jnp.int32))

    counter_out_p, h_p = _run_fused_encoder(params, counters_p, tokens_tm, lengths2d, BP, H)

    block_counters_encoding = counter_out_p[:B, :counter_emb]       # (B, counter_emb)
    decoder_hidden = h_p[None, :B, :]                                # (num_layers=1, B, H)

    # TODO(synk): bidirectional / multi-layer RNN, LSTM variant and the optional
    # post-RNN linear layer are not implemented; dropout is identity (eval mode).
    return EncoderContext(decoder_hidden=decoder_hidden,
                          decoder_input_concat=block_counters_encoding,
                          decoder_hidden_concat=block_counters_encoding)


# -----------------------------------------------------------------------------
# Parameter construction: raw (PyTorch-like, transposed to (in,out)) + packing
# -----------------------------------------------------------------------------
def init_raw_params(key, *, d_in, counter_emb, vocab, emb_dim, hidden):
    ks = jax.random.split(key, 15)
    s = 0.1
    n = lambda k, shape: s * jax.random.normal(k, shape, jnp.float32)
    return {
        "wir": n(ks[0], (emb_dim, hidden)), "wiz": n(ks[1], (emb_dim, hidden)),
        "win": n(ks[2], (emb_dim, hidden)),
        "whr": n(ks[3], (hidden, hidden)), "whz": n(ks[4], (hidden, hidden)),
        "whn": n(ks[5], (hidden, hidden)),
        "b_ir": n(ks[6], (1, hidden)), "b_iz": n(ks[7], (1, hidden)),
        "b_in": n(ks[8], (1, hidden)),
        "b_hr": n(ks[9], (1, hidden)), "b_hz": n(ks[10], (1, hidden)),
        "b_hn": n(ks[11], (1, hidden)),
        "emb_table": n(ks[12], (vocab, emb_dim)),
        "counter_w": n(ks[13], (d_in, counter_emb)),
        "counter_b": n(ks[14], (1, counter_emb)),
    }


def pack_params(raw, *, counter_emb, hidden):
    """One-time packing: fuse gate weights at true width, fold biases,
    store weights in bf16, lane-align the counter feature dim."""
    H = hidden
    GW = LANE
    assert 3 * H <= GW, "compact gate packing requires 3*hidden <= 128"
    # TODO(synk): for hidden > 42 fall back to a per-gate 128-lane layout.
    assert counter_emb <= LANE

    # Fused GRU gate weights: columns [0:H)=r, [H:2H)=z, [2H:3H)=n, rest zero.
    wi_small = jnp.concatenate([raw["wir"], raw["wiz"], raw["win"]], axis=1)      # (E, 3H)
    wi_pack = jnp.pad(wi_small, ((0, 0), (0, GW - 3 * H))).astype(jnp.bfloat16)   # (E, 128) bf16
    wh_small = jnp.concatenate([raw["whr"], raw["whz"], raw["whn"]], axis=1)      # (H, 3H)
    wh_pack = jnp.pad(wh_small, ((0, 0), (0, GW - 3 * H))).astype(jnp.bfloat16)   # (H, 128) bf16
    bi_small = jnp.concatenate([raw["b_ir"] + raw["b_hr"],
                                raw["b_iz"] + raw["b_hz"],
                                raw["b_in"]], axis=1)                             # (1, 3H)
    bi_pack = jnp.pad(bi_small, ((0, 0), (0, GW - 3 * H)))                        # (1, 128) f32
    bhn_p = raw["b_hn"]                                                           # (1, H)   f32

    vocab = raw["emb_table"].shape[0]
    vp = _round_up(max(vocab, LANE), LANE)
    emb_table_p = jnp.pad(raw["emb_table"],
                          ((0, vp - vocab), (0, 0))).astype(jnp.bfloat16)         # (VP, E) bf16

    d_in = raw["counter_w"].shape[0]
    dp = _round_up(d_in, LANE)                                                    # 487 -> 512
    counter_w_p = jnp.pad(raw["counter_w"],
                          ((0, dp - d_in), (0, LANE - counter_emb))
                          ).astype(jnp.bfloat16)                                  # (512, 128) bf16
    counter_b_p = jnp.pad(raw["counter_b"], ((0, 0), (0, LANE - counter_emb)))    # (1, 128) f32

    return {
        "wi_pack": wi_pack, "bi_pack": bi_pack, "wh_pack": wh_pack, "bhn_p": bhn_p,
        "emb_table_p": emb_table_p,
        "counter_w_p": counter_w_p, "counter_b_p": counter_b_p,
        "counter_emb": counter_emb, "hidden": hidden,
    }


# -----------------------------------------------------------------------------
# Pure-JAX reference (uses the raw / unpacked parameters) for correctness check
# -----------------------------------------------------------------------------
def reference_forward(raw, counters, tokens, lengths):
    c = jnp.maximum(counters @ raw["counter_w"] + raw["counter_b"], 0.0)
    emb = raw["emb_table"][tokens]                    # (B, T, E)
    B, T, _ = emb.shape
    H = raw["whr"].shape[1]
    h = jnp.zeros((B, H), jnp.float32)
    for t in range(T):
        x = emb[:, t, :]
        r = jax.nn.sigmoid(x @ raw["wir"] + raw["b_ir"] + h @ raw["whr"] + raw["b_hr"])
        z = jax.nn.sigmoid(x @ raw["wiz"] + raw["b_iz"] + h @ raw["whz"] + raw["b_hz"])
        n = jnp.tanh(x @ raw["win"] + raw["b_in"] + r * (h @ raw["whn"] + raw["b_hn"]))
        h_new = (1.0 - z) * n + z * h
        h = jnp.where((lengths > t)[:, None], h_new, h)
    return c, h


if __name__ == "__main__":
    B, T = 2, 8
    VOCAB, EMB_DIM = 50, 16
    HIDDEN = 32
    # 18 features/region * 27 regions + 1 (use_existing_blocks_counter=False,
    # spatial_info_window_size=1)
    D_IN = 18 * 27 + 1
    COUNTER_EMB = 32

    root = jax.random.PRNGKey(0)
    k_params, k_cnt, k_tok = jax.random.split(root, 3)

    raw = init_raw_params(k_params, d_in=D_IN, counter_emb=COUNTER_EMB,
                          vocab=VOCAB, emb_dim=EMB_DIM, hidden=HIDDEN)
    # Snap parameters to bf16-representable values so the bf16-weight kernel and
    # the f32 reference operate on numerically identical weights (the kernel keeps
    # all activations / accumulation in f32, so results then agree tightly).
    raw = jax.tree_util.tree_map(
        lambda a: a.astype(jnp.bfloat16).astype(jnp.float32), raw)
    params = pack_params(raw, counter_emb=COUNTER_EMB, hidden=HIDDEN)

    counters = jax.random.normal(k_cnt, (B, D_IN), jnp.float32)
    tokens = jax.random.randint(k_tok, (B, T), 0, VOCAB, jnp.int32)
    lengths = jnp.array([T, 5], dtype=jnp.int32)      # padded-sequence lengths

    out = forward(params, counters, tokens, lengths)
    jax.block_until_ready(out)

    assert out.decoder_hidden.shape == (1, B, HIDDEN)
    assert out.decoder_input_concat.shape == (B, COUNTER_EMB)
    assert out.decoder_hidden_concat.shape == (B, COUNTER_EMB)

    ref_c, ref_h = reference_forward(raw, counters, tokens, lengths)
    assert jnp.allclose(out.decoder_input_concat, ref_c, atol=5e-3, rtol=5e-3)
    assert jnp.allclose(out.decoder_hidden[0], ref_h, atol=5e-3, rtol=5e-3)

    print("KERNEL_OK")
</pallas_src>

<mosaic_0001>
module attributes {stable_mosaic.version = 11 : i64} {
  func.func @_fused_encoder_kernel(%arg0: memref<8x512xf32, #tpu.memory_space<vmem>>, %arg1: memref<512x128xbf16, #tpu.memory_space<vmem>>, %arg2: memref<1x128xf32, #tpu.memory_space<vmem>>, %arg3: memref<64x1xi32, #tpu.memory_space<vmem>>, %arg4: memref<128x16xbf16, #tpu.memory_space<vmem>>, %arg5: memref<16x128xbf16, #tpu.memory_space<vmem>>, %arg6: memref<1x128xf32, #tpu.memory_space<vmem>>, %arg7: memref<32x128xbf16, #tpu.memory_space<vmem>>, %arg8: memref<1x32xf32, #tpu.memory_space<vmem>>, %arg9: memref<8x1xi32, #tpu.memory_space<vmem>>, %arg10: memref<8x128xf32, #tpu.memory_space<vmem>>, %arg11: memref<8x32xf32, #tpu.memory_space<vmem>>) attributes {dimension_semantics = [], scalar_prefetch = 0 : i64, scratch_operands = 0 : i64, tpu.core_type = #tpu.core_type<tc>} {
    %c0 = arith.constant 0 : index
    %c0_0 = arith.constant 0 : index
    %0 = vector.load %arg0[%c0, %c0_0] : memref<8x512xf32, #tpu.memory_space<vmem>>, vector<8x512xf32>
    %c0_1 = arith.constant 0 : index
    %c0_2 = arith.constant 0 : index
    %1 = vector.load %arg1[%c0_1, %c0_2] : memref<512x128xbf16, #tpu.memory_space<vmem>>, vector<512x128xbf16>
    %cst = arith.constant dense<0.000000e+00> : vector<8x128xf32>
    %2 = tpu.matmul %0, %1, %cst {dimension_numbers = #tpu.dot_dimension_numbers<[1], [0], [0], [1], [0, 0, 1, 1], [], []>} : vector<8x512xf32>, vector<512x128xbf16>, vector<8x128xf32> -> vector<8x128xf32>
    %c0_3 = arith.constant 0 : index
    %c0_4 = arith.constant 0 : index
    %3 = vector.load %arg2[%c0_3, %c0_4] : memref<1x128xf32, #tpu.memory_space<vmem>>, vector<1x128xf32>
    %4 = vector.broadcast %3 : vector<1x128xf32> to vector<8x128xf32>
    %5 = arith.addf %2, %4 : vector<8x128xf32>
    %cst_5 = arith.constant 0.000000e+00 : f32
    %6 = vector.broadcast %cst_5 : f32 to vector<8x128xf32>
    %7 = arith.maximumf %5, %6 : vector<8x128xf32>
    %c0_6 = arith.constant 0 : index
    %c0_7 = arith.constant 0 : index
    %8 = vector.load %arg10[%c0_6, %c0_7] : memref<8x128xf32, #tpu.memory_space<vmem>>, vector<8x128xf32>
    tpu.vector_store %arg10[%c0_6, %c0_7], %7 {strides = array<i32>} : memref<8x128xf32, #tpu.memory_space<vmem>>, vector<8x128xf32>,
    %c0_8 = arith.constant 0 : index
    %c0_9 = arith.constant 0 : index
    %9 = vector.load %arg3[%c0_8, %c0_9] : memref<64x1xi32, #tpu.memory_space<vmem>>, vector<64x1xi32>
    %10 = tpu.iota {dimensions = array<i32: 1>} : vector<64x128xi32>
    %11 = vector.broadcast %9 : vector<64x1xi32> to vector<64x128xi32>
    %12 = arith.cmpi eq, %11, %10 : vector<64x128xi32>
    %13 = arith.extui %12 : vector<64x128xi1> to vector<64x128xi32>
    %14 = arith.sitofp %13 : vector<64x128xi32> to vector<64x128xf32>
    %15 = arith.truncf %14 : vector<64x128xf32> to vector<64x128xbf16>
    %c0_10 = arith.constant 0 : index
    %c0_11 = arith.constant 0 : index
    %16 = vector.load %arg4[%c0_10, %c0_11] : memref<128x16xbf16, #tpu.memory_space<vmem>>, vector<128x16xbf16>
    %cst_12 = arith.constant dense<0.000000e+00> : vector<64x16xf32>
    %17 = tpu.matmul %15, %16, %cst_12 {dimension_numbers = #tpu.dot_dimension_numbers<[1], [0], [0], [1], [0, 0, 1, 1], [], []>} : vector<64x128xbf16>, vector<128x16xbf16>, vector<64x16xf32> -> vector<64x16xf32>
    %18 = arith.truncf %17 : vector<64x16xf32> to vector<64x16xbf16>
    %c0_13 = arith.constant 0 : index
    %c0_14 = arith.constant 0 : index
    %19 = vector.load %arg5[%c0_13, %c0_14] : memref<16x128xbf16, #tpu.memory_space<vmem>>, vector<16x128xbf16>
    %cst_15 = arith.constant dense<0.000000e+00> : vector<64x128xf32>
    %20 = tpu.matmul %18, %19, %cst_15 {dimension_numbers = #tpu.dot_dimension_numbers<[1], [0], [0], [1], [0, 0, 1, 1], [], []>} : vector<64x16xbf16>, vector<16x128xbf16>, vector<64x128xf32> -> vector<64x128xf32>
    %c0_16 = arith.constant 0 : index
    %c0_17 = arith.constant 0 : index
    %21 = vector.load %arg6[%c0_16, %c0_17] : memref<1x128xf32, #tpu.memory_space<vmem>>, vector<1x128xf32>
    %22 = vector.broadcast %21 : vector<1x128xf32> to vector<64x128xf32>
    %23 = arith.addf %20, %22 : vector<64x128xf32>
    %c0_18 = arith.constant 0 : index
    %c0_19 = arith.constant 0 : index
    %24 = vector.load %arg8[%c0_18, %c0_19] : memref<1x32xf32, #tpu.memory_space<vmem>>, vector<1x32xf32>
    %c0_20 = arith.constant 0 : index
    %c0_21 = arith.constant 0 : index
    %25 = vector.load %arg9[%c0_20, %c0_21] : memref<8x1xi32, #tpu.memory_space<vmem>>, vector<8x1xi32>
    %26 = vector.shape_cast %25 : vector<8x1xi32> to vector<8x1xi32>
    %27 = vector.broadcast %26 : vector<8x1xi32> to vector<8x32xi32>
    %cst_22 = arith.constant 0.000000e+00 : f32
    %28 = vector.broadcast %cst_22 : f32 to vector<8x32xf32>
    %29 = vector.extract_strided_slice %23 {offsets = [0, 0], sizes = [8, 128], strides = [1, 1]} : vector<64x128xf32> to vector<8x128xf32>
    %c0_23 = arith.constant 0 : index
    %c0_24 = arith.constant 0 : index
    %30 = vector.load %arg7[%c0_23, %c0_24] : memref<32x128xbf16, #tpu.memory_space<vmem>>, vector<32x128xbf16>
    %cst_25 = arith.constant dense<0.000000e+00> : vector<8x128xf32>
    %31 = tpu.matmul %28, %30, %cst_25 {dimension_numbers = #tpu.dot_dimension_numbers<[1], [0], [0], [1], [0, 0, 1, 1], [], []>} : vector<8x32xf32>, vector<32x128xbf16>, vector<8x128xf32> -> vector<8x128xf32>
    %32 = arith.addf %29, %31 : vector<8x128xf32>
    %33 = vector.extract_strided_slice %32 {offsets = [0, 0], sizes = [8, 32], strides = [1, 1]} : vector<8x128xf32> to vector<8x32xf32>
    %34 = arith.negf %33 : vector<8x32xf32>
    %35 = math.exp %34 : vector<8x32xf32>
    %cst_26 = arith.constant 1.000000e+00 : f32
    %36 = vector.broadcast %cst_26 : f32 to vector<8x32xf32>
    %37 = arith.addf %36, %35 : vector<8x32xf32>
    %38 = arith.divf %36, %37 : vector<8x32xf32>
    %39 = vector.extract_strided_slice %32 {offsets = [0, 32], sizes = [8, 32], strides = [1, 1]} : vector<8x128xf32> to vector<8x32xf32>
    %40 = arith.negf %39 : vector<8x32xf32>
    %41 = math.exp %40 : vector<8x32xf32>
    %cst_27 = arith.constant 1.000000e+00 : f32
    %42 = vector.broadcast %cst_27 : f32 to vector<8x32xf32>
    %43 = arith.addf %42, %41 : vector<8x32xf32>
    %44 = arith.divf %42, %43 : vector<8x32xf32>
    %45 = vector.extract_strided_slice %29 {offsets = [0, 64], sizes = [8, 32], strides = [1, 1]} : vector<8x128xf32> to vector<8x32xf32>
    %46 = vector.extract_strided_slice %31 {offsets = [0, 64], sizes = [8, 32], strides = [1, 1]} : vector<8x128xf32> to vector<8x32xf32>
    %47 = vector.broadcast %24 : vector<1x32xf32> to vector<8x32xf32>
    %48 = arith.addf %46, %47 : vector<8x32xf32>
    %49 = arith.mulf %38, %48 : vector<8x32xf32>
    %50 = arith.addf %45, %49 : vector<8x32xf32>
    %51 = math.tanh %50 : vector<8x32xf32>
    %cst_28 = arith.constant 1.000000e+00 : f32
    %52 = vector.broadcast %cst_28 : f32 to vector<8x32xf32>
    %53 = arith.subf %52, %44 : vector<8x32xf32>
    %54 = arith.mulf %53, %51 : vector<8x32xf32>
    %55 = arith.mulf %44, %28 : vector<8x32xf32>
    %56 = arith.addf %54, %55 : vector<8x32xf32>
    %c0_i32 = arith.constant 0 : i32
    %57 = vector.broadcast %c0_i32 : i32 to vector<8x32xi32>
    %58 = arith.cmpi sgt, %27, %57 : vector<8x32xi32>
    %59 = arith.select %58, %56, %28 : vector<8x32xi1>, vector<8x32xf32>
    %60 = vector.extract_strided_slice %23 {offsets = [8, 0], sizes = [8, 128], strides = [1, 1]} : vector<64x128xf32> to vector<8x128xf32>
    %c0_29 = arith.constant 0 : index
    %c0_30 = arith.constant 0 : index
    %61 = vector.load %arg7[%c0_29, %c0_30] : memref<32x128xbf16, #tpu.memory_space<vmem>>, vector<32x128xbf16>
    %cst_31 = arith.constant dense<0.000000e+00> : vector<8x128xf32>
    %62 = tpu.matmul %59, %61, %cst_31 {dimension_numbers = #tpu.dot_dimension_numbers<[1], [0], [0], [1], [0, 0, 1, 1], [], []>} : vector<8x32xf32>, vector<32x128xbf16>, vector<8x128xf32> -> vector<8x128xf32>
    %63 = arith.addf %60, %62 : vector<8x128xf32>
    %64 = vector.extract_strided_slice %63 {offsets = [0, 0], sizes = [8, 32], strides = [1, 1]} : vector<8x128xf32> to vector<8x32xf32>
    %65 = arith.negf %64 : vector<8x32xf32>
    %66 = math.exp %65 : vector<8x32xf32>
    %cst_32 = arith.constant 1.000000e+00 : f32
    %67 = vector.broadcast %cst_32 : f32 to vector<8x32xf32>
    %68 = arith.addf %67, %66 : vector<8x32xf32>
    %69 = arith.divf %67, %68 : vector<8x32xf32>
    %70 = vector.extract_strided_slice %63 {offsets = [0, 32], sizes = [8, 32], strides = [1, 1]} : vector<8x128xf32> to vector<8x32xf32>
    %71 = arith.negf %70 : vector<8x32xf32>
    %72 = math.exp %71 : vector<8x32xf32>
    %cst_33 = arith.constant 1.000000e+00 : f32
    %73 = vector.broadcast %cst_33 : f32 to vector<8x32xf32>
    %74 = arith.addf %73, %72 : vector<8x32xf32>
    %75 = arith.divf %73, %74 : vector<8x32xf32>
    %76 = vector.extract_strided_slice %60 {offsets = [0, 64], sizes = [8, 32], strides = [1, 1]} : vector<8x128xf32> to vector<8x32xf32>
    %77 = vector.extract_strided_slice %62 {offsets = [0, 64], sizes = [8, 32], strides = [1, 1]} : vector<8x128xf32> to vector<8x32xf32>
    %78 = vector.broadcast %24 : vector<1x32xf32> to vector<8x32xf32>
    %79 = arith.addf %77, %78 : vector<8x32xf32>
    %80 = arith.mulf %69, %79 : vector<8x32xf32>
    %81 = arith.addf %76, %80 : vector<8x32xf32>
    %82 = math.tanh %81 : vector<8x32xf32>
    %cst_34 = arith.constant 1.000000e+00 : f32
    %83 = vector.broadcast %cst_34 : f32 to vector<8x32xf32>
    %84 = arith.subf %83, %75 : vector<8x32xf32>
    %85 = arith.mulf %84, %82 : vector<8x32xf32>
    %86 = arith.mulf %75, %59 : vector<8x32xf32>
    %87 = arith.addf %85, %86 : vector<8x32xf32>
    %c1_i32 = arith.constant 1 : i32
    %88 = vector.broadcast %c1_i32 : i32 to vector<8x32xi32>
    %89 = arith.cmpi sgt, %27, %88 : vector<8x32xi32>
    %90 = arith.select %89, %87, %59 : vector<8x32xi1>, vector<8x32xf32>
    %91 = vector.extract_strided_slice %23 {offsets = [16, 0], sizes = [8, 128], strides = [1, 1]} : vector<64x128xf32> to vector<8x128xf32>
    %c0_35 = arith.constant 0 : index
    %c0_36 = arith.constant 0 : index
    %92 = vector.load %arg7[%c0_35, %c0_36] : memref<32x128xbf16, #tpu.memory_space<vmem>>, vector<32x128xbf16>
    %cst_37 = arith.constant dense<0.000000e+00> : vector<8x128xf32>
    %93 = tpu.matmul %90, %92, %cst_37 {dimension_numbers = #tpu.dot_dimension_numbers<[1], [0], [0], [1], [0, 0, 1, 1], [], []>} : vector<8x32xf32>, vector<32x128xbf16>, vector<8x128xf32> -> vector<8x128xf32>
    %94 = arith.addf %91, %93 : vector<8x128xf32>
    %95 = vector.extract_strided_slice %94 {offsets = [0, 0], sizes = [8, 32], strides = [1, 1]} : vector<8x128xf32> to vector<8x32xf32>
    %96 = arith.negf %95 : vector<8x32xf32>
    %97 = math.exp %96 : vector<8x32xf32>
    %cst_38 = arith.constant 1.000000e+00 : f32
    %98 = vector.broadcast %cst_38 : f32 to vector<8x32xf32>
    %99 = arith.addf %98, %97 : vector<8x32xf32>
    %100 = arith.divf %98, %99 : vector<8x32xf32>
    %101 = vector.extract_strided_slice %94 {offsets = [0, 32], sizes = [8, 32], strides = [1, 1]} : vector<8x128xf32> to vector<8x32xf32>
    %102 = arith.negf %101 : vector<8x32xf32>
    %103 = math.exp %102 : vector<8x32xf32>
    %cst_39 = arith.constant 1.000000e+00 : f32
    %104 = vector.broadcast %cst_39 : f32 to vector<8x32xf32>
    %105 = arith.addf %104, %103 : vector<8x32xf32>
    %106 = arith.divf %104, %105 : vector<8x32xf32>
    %107 = vector.extract_strided_slice %91 {offsets = [0, 64], sizes = [8, 32], strides = [1, 1]} : vector<8x128xf32> to vector<8x32xf32>
    %108 = vector.extract_strided_slice %93 {offsets = [0, 64], sizes = [8, 32], strides = [1, 1]} : vector<8x128xf32> to vector<8x32xf32>
    %109 = vector.broadcast %24 : vector<1x32xf32> to vector<8x32xf32>
    %110 = arith.addf %108, %109 : vector<8x32xf32>
    %111 = arith.mulf %100, %110 : vector<8x32xf32>
    %112 = arith.addf %107, %111 : vector<8x32xf32>
    %113 = math.tanh %112 : vector<8x32xf32>
    %cst_40 = arith.constant 1.000000e+00 : f32
    %114 = vector.broadcast %cst_40 : f32 to vector<8x32xf32>
    %115 = arith.subf %114, %106 : vector<8x32xf32>
    %116 = arith.mulf %115, %113 : vector<8x32xf32>
    %117 = arith.mulf %106, %90 : vector<8x32xf32>
    %118 = arith.addf %116, %117 : vector<8x32xf32>
    %c2_i32 = arith.constant 2 : i32
    %119 = vector.broadcast %c2_i32 : i32 to vector<8x32xi32>
    %120 = arith.cmpi sgt, %27, %119 : vector<8x32xi32>
    %121 = arith.select %120, %118, %90 : vector<8x32xi1>, vector<8x32xf32>
    %122 = vector.extract_strided_slice %23 {offsets = [24, 0], sizes = [8, 128], strides = [1, 1]} : vector<64x128xf32> to vector<8x128xf32>
    %c0_41 = arith.constant 0 : index
    %c0_42 = arith.constant 0 : index
    %123 = vector.load %arg7[%c0_41, %c0_42] : memref<32x128xbf16, #tpu.memory_space<vmem>>, vector<32x128xbf16>
    %cst_43 = arith.constant dense<0.000000e+00> : vector<8x128xf32>
    %124 = tpu.matmul %121, %123, %cst_43 {dimension_numbers = #tpu.dot_dimension_numbers<[1], [0], [0], [1], [0, 0, 1, 1], [], []>} : vector<8x32xf32>, vector<32x128xbf16>, vector<8x128xf32> -> vector<8x128xf32>
    %125 = arith.addf %122, %124 : vector<8x128xf32>
    %126 = vector.extract_strided_slice %125 {offsets = [0, 0], sizes = [8, 32], strides = [1, 1]} : vector<8x128xf32> to vector<8x32xf32>
    %127 = arith.negf %126 : vector<8x32xf32>
    %128 = math.exp %127 : vector<8x32xf32>
    %cst_44 = arith.constant 1.000000e+00 : f32
    %129 = vector.broadcast %cst_44 : f32 to vector<8x32xf32>
    %130 = arith.addf %129, %128 : vector<8x32xf32>
    %131 = arith.divf %129, %130 : vector<8x32xf32>
    %132 = vector.extract_strided_slice %125 {offsets = [0, 32], sizes = [8, 32], strides = [1, 1]} : vector<8x128xf32> to vector<8x32xf32>
    %133 = arith.negf %132 : vector<8x32xf32>
    %134 = math.exp %133 : vector<8x32xf32>
    %cst_45 = arith.constant 1.000000e+00 : f32
    %135 = vector.broadcast %cst_45 : f32 to vector<8x32xf32>
    %136 = arith.addf %135, %134 : vector<8x32xf32>
    %137 = arith.divf %135, %136 : vector<8x32xf32>
    %138 = vector.extract_strided_slice %122 {offsets = [0, 64], sizes = [8, 32], strides = [1, 1]} : vector<8x128xf32> to vector<8x32xf32>
    %139 = vector.extract_strided_slice %124 {offsets = [0, 64], sizes = [8, 32], strides = [1, 1]} : vector<8x128xf32> to vector<8x32xf32>
    %140 = vector.broadcast %24 : vector<1x32xf32> to vector<8x32xf32>
    %141 = arith.addf %139, %140 : vector<8x32xf32>
    %142 = arith.mulf %131, %141 : vector<8x32xf32>
    %143 = arith.addf %138, %142 : vector<8x32xf32>
    %144 = math.tanh %143 : vector<8x32xf32>
    %cst_46 = arith.constant 1.000000e+00 : f32
    %145 = vector.broadcast %cst_46 : f32 to vector<8x32xf32>
    %146 = arith.subf %145, %137 : vector<8x32xf32>
    %147 = arith.mulf %146, %144 : vector<8x32xf32>
    %148 = arith.mulf %137, %121 : vector<8x32xf32>
    %149 = arith.addf %147, %148 : vector<8x32xf32>
    %c3_i32 = arith.constant 3 : i32
    %150 = vector.broadcast %c3_i32 : i32 to vector<8x32xi32>
    %151 = arith.cmpi sgt, %27, %150 : vector<8x32xi32>
    %152 = arith.select %151, %149, %121 : vector<8x32xi1>, vector<8x32xf32>
    %153 = vector.extract_strided_slice %23 {offsets = [32, 0], sizes = [8, 128], strides = [1, 1]} : vector<64x128xf32> to vector<8x128xf32>
    %c0_47 = arith.constant 0 : index
    %c0_48 = arith.constant 0 : index
    %154 = vector.load %arg7[%c0_47, %c0_48] : memref<32x128xbf16, #tpu.memory_space<vmem>>, vector<32x128xbf16>
    %cst_49 = arith.constant dense<0.000000e+00> : vector<8x128xf32>
    %155 = tpu.matmul %152, %154, %cst_49 {dimension_numbers = #tpu.dot_dimension_numbers<[1], [0], [0], [1], [0, 0, 1, 1], [], []>} : vector<8x32xf32>, vector<32x128xbf16>, vector<8x128xf32> -> vector<8x128xf32>
    %156 = arith.addf %153, %155 : vector<8x128xf32>
    %157 = vector.extract_strided_slice %156 {offsets = [0, 0], sizes = [8, 32], strides = [1, 1]} : vector<8x128xf32> to vector<8x32xf32>
    %158 = arith.negf %157 : vector<8x32xf32>
    %159 = math.exp %158 : vector<8x32xf32>
    %cst_50 = arith.constant 1.000000e+00 : f32
    %160 = vector.broadcast %cst_50 : f32 to vector<8x32xf32>
    %161 = arith.addf %160, %159 : vector<8x32xf32>
    %162 = arith.divf %160, %161 : vector<8x32xf32>
    %163 = vector.extract_strided_slice %156 {offsets = [0, 32], sizes = [8, 32], strides = [1, 1]} : vector<8x128xf32> to vector<8x32xf32>
    %164 = arith.negf %163 : vector<8x32xf32>
    %165 = math.exp %164 : vector<8x32xf32>
    %cst_51 = arith.constant 1.000000e+00 : f32
    %166 = vector.broadcast %cst_51 : f32 to vector<8x32xf32>
    %167 = arith.addf %166, %165 : vector<8x32xf32>
    %168 = arith.divf %166, %167 : vector<8x32xf32>
    %169 = vector.extract_strided_slice %153 {offsets = [0, 64], sizes = [8, 32], strides = [1, 1]} : vector<8x128xf32> to vector<8x32xf32>
    %170 = vector.extract_strided_slice %155 {offsets = [0, 64], sizes = [8, 32], strides = [1, 1]} : vector<8x128xf32> to vector<8x32xf32>
    %171 = vector.broadcast %24 : vector<1x32xf32> to vector<8x32xf32>
    %172 = arith.addf %170, %171 : vector<8x32xf32>
    %173 = arith.mulf %162, %172 : vector<8x32xf32>
    %174 = arith.addf %169, %173 : vector<8x32xf32>
    %175 = math.tanh %174 : vector<8x32xf32>
    %cst_52 = arith.constant 1.000000e+00 : f32
    %176 = vector.broadcast %cst_52 : f32 to vector<8x32xf32>
    %177 = arith.subf %176, %168 : vector<8x32xf32>
    %178 = arith.mulf %177, %175 : vector<8x32xf32>
    %179 = arith.mulf %168, %152 : vector<8x32xf32>
    %180 = arith.addf %178, %179 : vector<8x32xf32>
    %c4_i32 = arith.constant 4 : i32
    %181 = vector.broadcast %c4_i32 : i32 to vector<8x32xi32>
    %182 = arith.cmpi sgt, %27, %181 : vector<8x32xi32>
    %183 = arith.select %182, %180, %152 : vector<8x32xi1>, vector<8x32xf32>
    %184 = vector.extract_strided_slice %23 {offsets = [40, 0], sizes = [8, 128], strides = [1, 1]} : vector<64x128xf32> to vector<8x128xf32>
    %c0_53 = arith.constant 0 : index
    %c0_54 = arith.constant 0 : index
    %185 = vector.load %arg7[%c0_53, %c0_54] : memref<32x128xbf16, #tpu.memory_space<vmem>>, vector<32x128xbf16>
    %cst_55 = arith.constant dense<0.000000e+00> : vector<8x128xf32>
    %186 = tpu.matmul %183, %185, %cst_55 {dimension_numbers = #tpu.dot_dimension_numbers<[1], [0], [0], [1], [0, 0, 1, 1], [], []>} : vector<8x32xf32>, vector<32x128xbf16>, vector<8x128xf32> -> vector<8x128xf32>
    %187 = arith.addf %184, %186 : vector<8x128xf32>
    %188 = vector.extract_strided_slice %187 {offsets = [0, 0], sizes = [8, 32], strides = [1, 1]} : vector<8x128xf32> to vector<8x32xf32>
    %189 = arith.negf %188 : vector<8x32xf32>
    %190 = math.exp %189 : vector<8x32xf32>
    %cst_56 = arith.constant 1.000000e+00 : f32
    %191 = vector.broadcast %cst_56 : f32 to vector<8x32xf32>
    %192 = arith.addf %191, %190 : vector<8x32xf32>
    %193 = arith.divf %191, %192 : vector<8x32xf32>
    %194 = vector.extract_strided_slice %187 {offsets = [0, 32], sizes = [8, 32], strides = [1, 1]} : vector<8x128xf32> to vector<8x32xf32>
    %195 = arith.negf %194 : vector<8x32xf32>
    %196 = math.exp %195 : vector<8x32xf32>
    %cst_57 = arith.constant 1.000000e+00 : f32
    %197 = vector.broadcast %cst_57 : f32 to vector<8x32xf32>
    %198 = arith.addf %197, %196 : vector<8x32xf32>
    %199 = arith.divf %197, %198 : vector<8x32xf32>
    %200 = vector.extract_strided_slice %184 {offsets = [0, 64], sizes = [8, 32], strides = [1, 1]} : vector<8x128xf32> to vector<8x32xf32>
    %201 = vector.extract_strided_slice %186 {offsets = [0, 64], sizes = [8, 32], strides = [1, 1]} : vector<8x128xf32> to vector<8x32xf32>
    %202 = vector.broadcast %24 : vector<1x32xf32> to vector<8x32xf32>
    %203 = arith.addf %201, %202 : vector<8x32xf32>
    %204 = arith.mulf %193, %203 : vector<8x32xf32>
    %205 = arith.addf %200, %204 : vector<8x32xf32>
    %206 = math.tanh %205 : vector<8x32xf32>
    %cst_58 = arith.constant 1.000000e+00 : f32
    %207 = vector.broadcast %cst_58 : f32 to vector<8x32xf32>
    %208 = arith.subf %207, %199 : vector<8x32xf32>
    %209 = arith.mulf %208, %206 : vector<8x32xf32>
    %210 = arith.mulf %199, %183 : vector<8x32xf32>
    %211 = arith.addf %209, %210 : vector<8x32xf32>
    %c5_i32 = arith.constant 5 : i32
    %212 = vector.broadcast %c5_i32 : i32 to vector<8x32xi32>
    %213 = arith.cmpi sgt, %27, %212 : vector<8x32xi32>
    %214 = arith.select %213, %211, %183 : vector<8x32xi1>, vector<8x32xf32>
    %215 = vector.extract_strided_slice %23 {offsets = [48, 0], sizes = [8, 128], strides = [1, 1]} : vector<64x128xf32> to vector<8x128xf32>
    %c0_59 = arith.constant 0 : index
    %c0_60 = arith.constant 0 : index
    %216 = vector.load %arg7[%c0_59, %c0_60] : memref<32x128xbf16, #tpu.memory_space<vmem>>, vector<32x128xbf16>
    %cst_61 = arith.constant dense<0.000000e+00> : vector<8x128xf32>
    %217 = tpu.matmul %214, %216, %cst_61 {dimension_numbers = #tpu.dot_dimension_numbers<[1], [0], [0], [1], [0, 0, 1, 1], [], []>} : vector<8x32xf32>, vector<32x128xbf16>, vector<8x128xf32> -> vector<8x128xf32>
    %218 = arith.addf %215, %217 : vector<8x128xf32>
    %219 = vector.extract_strided_slice %218 {offsets = [0, 0], sizes = [8, 32], strides = [1, 1]} : vector<8x128xf32> to vector<8x32xf32>
    %220 = arith.negf %219 : vector<8x32xf32>
    %221 = math.exp %220 : vector<8x32xf32>
    %cst_62 = arith.constant 1.000000e+00 : f32
    %222 = vector.broadcast %cst_62 : f32 to vector<8x32xf32>
    %223 = arith.addf %222, %221 : vector<8x32xf32>
    %224 = arith.divf %222, %223 : vector<8x32xf32>
    %225 = vector.extract_strided_slice %218 {offsets = [0, 32], sizes = [8, 32], strides = [1, 1]} : vector<8x128xf32> to vector<8x32xf32>
    %226 = arith.negf %225 : vector<8x32xf32>
    %227 = math.exp %226 : vector<8x32xf32>
    %cst_63 = arith.constant 1.000000e+00 : f32
    %228 = vector.broadcast %cst_63 : f32 to vector<8x32xf32>
    %229 = arith.addf %228, %227 : vector<8x32xf32>
    %230 = arith.divf %228, %229 : vector<8x32xf32>
    %231 = vector.extract_strided_slice %215 {offsets = [0, 64], sizes = [8, 32], strides = [1, 1]} : vector<8x128xf32> to vector<8x32xf32>
    %232 = vector.extract_strided_slice %217 {offsets = [0, 64], sizes = [8, 32], strides = [1, 1]} : vector<8x128xf32> to vector<8x32xf32>
    %233 = vector.broadcast %24 : vector<1x32xf32> to vector<8x32xf32>
    %234 = arith.addf %232, %233 : vector<8x32xf32>
    %235 = arith.mulf %224, %234 : vector<8x32xf32>
    %236 = arith.addf %231, %235 : vector<8x32xf32>
    %237 = math.tanh %236 : vector<8x32xf32>
    %cst_64 = arith.constant 1.000000e+00 : f32
    %238 = vector.broadcast %cst_64 : f32 to vector<8x32xf32>
    %239 = arith.subf %238, %230 : vector<8x32xf32>
    %240 = arith.mulf %239, %237 : vector<8x32xf32>
    %241 = arith.mulf %230, %214 : vector<8x32xf32>
    %242 = arith.addf %240, %241 : vector<8x32xf32>
    %c6_i32 = arith.constant 6 : i32
    %243 = vector.broadcast %c6_i32 : i32 to vector<8x32xi32>
    %244 = arith.cmpi sgt, %27, %243 : vector<8x32xi32>
    %245 = arith.select %244, %242, %214 : vector<8x32xi1>, vector<8x32xf32>
    %246 = vector.extract_strided_slice %23 {offsets = [56, 0], sizes = [8, 128], strides = [1, 1]} : vector<64x128xf32> to vector<8x128xf32>
    %c0_65 = arith.constant 0 : index
    %c0_66 = arith.constant 0 : index
    %247 = vector.load %arg7[%c0_65, %c0_66] : memref<32x128xbf16, #tpu.memory_space<vmem>>, vector<32x128xbf16>
    %cst_67 = arith.constant dense<0.000000e+00> : vector<8x128xf32>
    %248 = tpu.matmul %245, %247, %cst_67 {dimension_numbers = #tpu.dot_dimension_numbers<[1], [0], [0], [1], [0, 0, 1, 1], [], []>} : vector<8x32xf32>, vector<32x128xbf16>, vector<8x128xf32> -> vector<8x128xf32>
    %249 = arith.addf %246, %248 : vector<8x128xf32>
    %250 = vector.extract_strided_slice %249 {offsets = [0, 0], sizes = [8, 32], strides = [1, 1]} : vector<8x128xf32> to vector<8x32xf32>
    %251 = arith.negf %250 : vector<8x32xf32>
    %252 = math.exp %251 : vector<8x32xf32>
    %cst_68 = arith.constant 1.000000e+00 : f32
    %253 = vector.broadcast %cst_68 : f32 to vector<8x32xf32>
    %254 = arith.addf %253, %252 : vector<8x32xf32>
    %255 = arith.divf %253, %254 : vector<8x32xf32>
    %256 = vector.extract_strided_slice %249 {offsets = [0, 32], sizes = [8, 32], strides = [1, 1]} : vector<8x128xf32> to vector<8x32xf32>
    %257 = arith.negf %256 : vector<8x32xf32>
    %258 = math.exp %257 : vector<8x32xf32>
    %cst_69 = arith.constant 1.000000e+00 : f32
    %259 = vector.broadcast %cst_69 : f32 to vector<8x32xf32>
    %260 = arith.addf %259, %258 : vector<8x32xf32>
    %261 = arith.divf %259, %260 : vector<8x32xf32>
    %262 = vector.extract_strided_slice %246 {offsets = [0, 64], sizes = [8, 32], strides = [1, 1]} : vector<8x128xf32> to vector<8x32xf32>
    %263 = vector.extract_strided_slice %248 {offsets = [0, 64], sizes = [8, 32], strides = [1, 1]} : vector<8x128xf32> to vector<8x32xf32>
    %264 = vector.broadcast %24 : vector<1x32xf32> to vector<8x32xf32>
    %265 = arith.addf %263, %264 : vector<8x32xf32>
    %266 = arith.mulf %255, %265 : vector<8x32xf32>
    %267 = arith.addf %262, %266 : vector<8x32xf32>
    %268 = math.tanh %267 : vector<8x32xf32>
    %cst_70 = arith.constant 1.000000e+00 : f32
    %269 = vector.broadcast %cst_70 : f32 to vector<8x32xf32>
    %270 = arith.subf %269, %261 : vector<8x32xf32>
    %271 = arith.mulf %270, %268 : vector<8x32xf32>
    %272 = arith.mulf %261, %245 : vector<8x32xf32>
    %273 = arith.addf %271, %272 : vector<8x32xf32>
    %c7_i32 = arith.constant 7 : i32
    %274 = vector.broadcast %c7_i32 : i32 to vector<8x32xi32>
    %275 = arith.cmpi sgt, %27, %274 : vector<8x32xi32>
    %276 = arith.select %275, %273, %245 : vector<8x32xi1>, vector<8x32xf32>
    %c0_71 = arith.constant 0 : index
    %c0_72 = arith.constant 0 : index
    %277 = vector.load %arg11[%c0_71, %c0_72] : memref<8x32xf32, #tpu.memory_space<vmem>>, vector<8x32xf32>
    tpu.vector_store %arg11[%c0_71, %c0_72], %276 {strides = array<i32>} : memref<8x32xf32, #tpu.memory_space<vmem>>, vector<8x32xf32>,
    return
  }
}

</mosaic_0001>

<bundles_post_ra>
// kernel: tpu_custom_call.1
= control target key start
LH: loop header
LB: loop body
LE: loop exit
PB: predicated region body
PF: predicated region fallthrough
CT: control target
= control target key end

     0   :  { %17 = vsyncpa [#allocation3], 0  ;;  %s2081_s0 = inlined_call_operand.vmem [shape: f32[8,512], index: 0, kind: input, shape index: {}]   ;;  %s2082_s1 = inlined_call_operand.hbm [shape: bf16[512,128], index: 1, kind: input, shape index: {}]   ;;  %s2083_s2 = inlined_call_operand.vmem [shape: f32[1,128], index: 2, kind: input, shape index: {}]   ;;  %s2084_s3 = inlined_call_operand.vmem [shape: s32[64,1], index: 3, kind: input, shape index: {}]   ;;  %s2085_s4 = inlined_call_operand.vmem [shape: bf16[128,16], index: 4, kind: input, shape index: {}]   ;;  %s2086_s5 = inlined_call_operand.vmem [shape: bf16[16,128], index: 5, kind: input, shape index: {}]   ;;  %s2087_s6 = inlined_call_operand.vmem [shape: f32[1,128], index: 6, kind: input, shape index: {}]   ;;  %s2088_s7 = inlined_call_operand.vmem [shape: bf16[32,128], index: 7, kind: input, shape index: {}]   ;;  %s2089_s8 = inlined_call_operand.vmem [shape: f32[1,32], index: 8, kind: input, shape index: {}]   ;;  %s2090_s9 = inlined_call_operand.vmem [shape: s32[8,1], index: 9, kind: input, shape index: {}]   ;;  %s2091_s10 = inlined_call_operand.hbm [shape: f32[8,128], index: 10, kind: output, shape index: {0}]   ;;  %s2092_s11 = inlined_call_operand.hbm [shape: f32[8,32], index: 11, kind: output, shape index: {1}]  }
   0x1   :  { %18 = vsyncpa [#allocation4], 0 }
   0x2   :  { %19 = vsyncpa [#allocation7], 0  ;;  %s1750_s17 = smov [#allocation2]   ;;  %s1678_s21 = scalar_lea.hbm %s2082_s1, 4096 }
   0x3   :  { %s27_s18 = sshll.u32 %s1750_s17, 4  ;;  %p1679_p0 = scmp.ne.s32.totalorder %s2082_s1, %s1678_s21  ;;  %s28_s18 = int_to_ptr.vmem [resolvable:$true] %s27_s18 }
   0x4   :  { %p1682_p1 = scmp.lt.u32.totalorder %s1678_s21, %s2082_s1 }
   0x6   :  { %p1684_p2 = pnand %p1682_p1, %p1679_p0 }
   0x8   :  { %1687 = shalt.err (!%p1684_p2)
}
   0x9   :  { %s1688_s26 = scalar_lea.vmem %s28_s18, 4096  ;;  %p1693_p4 = scmp.lt.s32.totalorder %s28_s18, %s28_s18 }
   0xa   :  { %p1689_p3 = scmp.ne.s32.totalorder %s28_s18, %s1688_s26  ;;  %p1694_p5 = scmp.lt.s32.totalorder %s1688_s26, %s1688_s26 }
   0xc   :  { %p1695_p6 = por %p1694_p5, %p1693_p4 }
   0xe   :  { %p1696_p7 = pnand %p1695_p6, %p1689_p3 }
  0x10   :  { %1699 = shalt.err (!%p1696_p7)
}
  0x11   :  { %s1751_s27 = smov 64   ;;  %s1752_s28 = smov 4  }
  0x12   :  { %33 = dma.hbm_to_vmem [thread:$0]  %s2082_s1, 4096, %s28_s18, [#allocation3], %s1751_s27, %s1751_s27, %s1752_s28  }
  0x13   :  { %1744 = dma.done.wait [#allocation3], 4096  }
  0x14   :  { %1745 = vsyncadd [#allocation3], 4294963200  ;;  %v1753_v0 = vmov 0   ;;  %v401_v1 = vld [vmem:[%s2084_s3 + $0x10] sm:$0xff]  ;;  %v399_v2 = vld [vmem:[%s2084_s3] sm:$0xff]  ;;  %v407_v53 = vlaneseq  ;;  %vm1756_vm12 = vmmov 0  }
  0x15   :  { %1586 = vset.pattern.permute.xlu1 %v1753_v0  ;;  %1585 = vset.pattern.permute.xlu0 %v1753_v0  ;;  %v402_v3 = vld [vmem:[%s2084_s3 + $0x18] sm:$0xff]  ;;  %v400_v4 = vld [vmem:[%s2084_s3 + $0x8] sm:$0xff]  ;;  %v1587_v5 = vld [vmem:[#allocation2 + $0x40] sm:$0xff]   ;;  %v1754_v59 = vmov 1.0|1.0   ;;  %vm609_vm13 = vcmask 130048  }
  0x16   :  { %416 = vperm.xlu1 %1586, %v401_v1   ;;  %410 = vperm.xlu0 %1585, %v399_v2   ;;  %v404_v6 = vld [vmem:[%s2084_s3 + $0x28] sm:$0xff]  ;;  %v403_v7 = vld [vmem:[%s2084_s3 + $0x20] sm:$0xff]  ;;  %v406_v12 = vld [vmem:[%s2084_s3 + $0x38] sm:$0xff]  ;;  %v408_v56 = vand.u32 127, %v407_v53  ;;  %v1755_v1 = vmov 0.0   ;;  %s1757_s18 = smov 96  }
  0x17   :  { %v1588_v8 = vld [vmem:[#allocation2] sm:$0xff]   ;;  %1406 = vmatprep.subr.bf16.mxu0 %v1587_v5  ;;  %v1591_v11 = vld [vmem:[#allocation2 + $0x48] sm:$0xff]   ;;  %v405_v13 = vld [vmem:[%s2084_s3 + $0x30] sm:$0xff]  ;;  %vm708_vm15 = vcmask 261120  }
  0x18   :  { %v1589_v9 = vld [vmem:[#allocation2 + $0xc0] sm:$0xff]   ;;  %1407 = vmatpush3.bf16.msra.mxu0 %v1588_v8  ;;  %v1592_v14 = vld [vmem:[#allocation2 + $0x8] sm:$0xff]   ;;  %v1595_v17 = vld [vmem:[#allocation2 + $0x50] sm:$0xff]  }
  0x19   :  { %v1590_v10 = vld [vmem:[#allocation2 + $0x80] sm:$0xff]   ;;  %1425 = vmatprep.subr.bf16.mxu1 %v1589_v9  ;;  %v1593_v15 = vld [vmem:[#allocation2 + $0xc8] sm:$0xff]   ;;  %1408 = vmatprep.subr.bf16.mxu0 %v1591_v11  ;;  %v1596_v18 = vld [vmem:[#allocation2 + $0x10] sm:$0xff]  }
  0x1a   :  { %419 = vperm.xlu1 %1586, %v402_v3   ;;  %413 = vperm.xlu0 %1585, %v400_v4   ;;  %v1594_v16 = vld [vmem:[#allocation2 + $0x88] sm:$0xff]   ;;  %v1597_v19 = vld [vmem:[#allocation2 + $0xd0] sm:$0xff]   ;;  %v1599_v21 = vld [vmem:[#allocation2 + $0x58] sm:$0xff]  }
  0x1b   :  { %1426 = vmatpush3.bf16.msra.mxu1 %v1590_v10  ;;  %v1598_v20 = vld [vmem:[#allocation2 + $0x90] sm:$0xff]   ;;  %v1600_v22 = vld [vmem:[#allocation2 + $0x18] sm:$0xff]   ;;  %v1603_v25 = vld [vmem:[#allocation2 + $0x60] sm:$0xff]  }
  0x1c   :  { %1409 = vmatpush3.bf16.msra.mxu0 %v1592_v14  ;;  %1427 = vmatprep.subr.bf16.mxu1 %v1593_v15  ;;  %v1601_v23 = vld [vmem:[#allocation2 + $0xd8] sm:$0xff]   ;;  %v1604_v26 = vld [vmem:[#allocation2 + $0x20] sm:$0xff]   ;;  %v1607_v29 = vld [vmem:[#allocation2 + $0x68] sm:$0xff]  }
  0x1d   :  { %1410 = vmatprep.subr.bf16.mxu0 %v1595_v17  ;;  %v1602_v24 = vld [vmem:[#allocation2 + $0x98] sm:$0xff]   ;;  %v1605_v27 = vld [vmem:[#allocation2 + $0xe0] sm:$0xff]   ;;  %v1608_v30 = vld [vmem:[#allocation2 + $0x28] sm:$0xff]  }
  0x1e   :  { %425 = vperm.xlu1 %1586, %v404_v6   ;;  %422 = vperm.xlu0 %1585, %v403_v7   ;;  %v1606_v28 = vld [vmem:[#allocation2 + $0xa0] sm:$0xff]   ;;  %v1609_v31 = vld [vmem:[#allocation2 + $0xe8] sm:$0xff]   ;;  %v1611_v33 = vld [vmem:[#allocation2 + $0x70] sm:$0xff]  }
  0x1f   :  { %1428 = vmatpush3.bf16.msra.mxu1 %v1594_v16  ;;  %v1610_v32 = vld [vmem:[#allocation2 + $0xa8] sm:$0xff]   ;;  %v1612_v34 = vld [vmem:[#allocation2 + $0x30] sm:$0xff]   ;;  %v1615_v37 = vld [vmem:[#allocation2 + $0x78] sm:$0xff]  }
  0x20   :  { %1411 = vmatpush3.bf16.msra.mxu0 %v1596_v18  ;;  %1429 = vmatprep.subr.bf16.mxu1 %v1597_v19  ;;  %v1613_v35 = vld [vmem:[#allocation2 + $0xf0] sm:$0xff]   ;;  %v1616_v38 = vld [vmem:[#allocation2 + $0x38] sm:$0xff]   ;;  %v55_v40 = vld [vmem:[%s2081_s0 + $0x8] sm:$0xff] }
  0x21   :  { %1412 = vmatprep.subr.bf16.mxu0 %v1599_v21  ;;  %v1614_v36 = vld [vmem:[#allocation2 + $0xb0] sm:$0xff]   ;;  %v1617_v39 = vld [vmem:[#allocation2 + $0xf8] sm:$0xff]   ;;  %353 = vmatprep.mubr.f32.mxu0 %v55_v40  ;;  %v54_v42 = vld [vmem:[%s2081_s0] sm:$0xff] }
  0x22   :  { %431 = vperm.xlu1 %1586, %v406_v12   ;;  %428 = vperm.xlu0 %1585, %v405_v13   ;;  %v1618_v41 = vld [vmem:[#allocation2 + $0xb8] sm:$0xff]   ;;  %v1619_v43 = vld [vmem:[%s2085_s4] sm:$0xff]   ;;  %v56_v45 = vld [vmem:[%s2081_s0 + $0x10] sm:$0xff] }
  0x23   :  { %1430 = vmatpush3.bf16.msra.mxu1 %v1598_v20  ;;  %v57_v44 = vld [vmem:[%s2081_s0 + $0x18] sm:$0xff]  ;;  %v1620_v46 = vld [vmem:[%s2085_s4 + $0x8] sm:$0xff]   ;;  %v1621_v47 = vld [vmem:[%s2085_s4 + $0x10] sm:$0xff]  }
  0x24   :  { %1413 = vmatpush3.bf16.msra.mxu0 %v1600_v22  ;;  %1431 = vmatprep.subr.bf16.mxu1 %v1601_v23  ;;  %v1622_v48 = vld [vmem:[%s2085_s4 + $0x18] sm:$0xff]   ;;  %v1623_v49 = vld [vmem:[%s2085_s4 + $0x20] sm:$0xff]   ;;  %v1624_v50 = vld [vmem:[%s2085_s4 + $0x28] sm:$0xff]  }
  0x25   :  { %1414 = vmatprep.subr.bf16.mxu0 %v1603_v25  ;;  %391 = vmatprep.mubr.f32.mxu1 %v57_v44  ;;  %v1625_v51 = vld [vmem:[%s2085_s4 + $0x30] sm:$0xff]   ;;  %v1626_v52 = vld [vmem:[%s2085_s4 + $0x38] sm:$0xff]   ;;  %v1627_v0 = vld [vmem:[%s2086_s5] sm:$0xff]  }
  0x26   :  { %v1901_v2 = vld [vmem:[%s2088_s7] sm:$0xff]   ;;  %v1909_v3 = vld [vmem:[%s2088_s7 + $0x8] sm:$0xff]  }
  0x27   :  { %1432 = vmatpush3.bf16.msra.mxu1 %v1602_v24  ;;  %v1391_v4 = vld [vmem:[%s2089_s8] ss:$0 sm:$0xff] }
  0x28   :  { %1415 = vmatpush3.bf16.msra.mxu0 %v1604_v26  ;;  %1433 = vmatprep.subr.bf16.mxu1 %v1605_v27  ;;  %v1325_v6 = vld [vmem:[%s2083_s2] ss:$0 sm:$0xff] }
  0x29   :  { %1416 = vmatprep.subr.bf16.mxu0 %v1607_v29  ;;  %762 = vrot.lane.b32.xlu0 %v1391_v4, %s1751_s27  ;;  %v1382_v27 = vld [vmem:[%s2087_s6] ss:$0 sm:$0xff] }
  0x2b   :  { %1434 = vmatpush3.bf16.msra.mxu1 %v1606_v28 }
  0x2c   :  { %1417 = vmatpush3.bf16.msra.mxu0 %v1608_v30  ;;  %1435 = vmatprep.subr.bf16.mxu1 %v1609_v31 }
  0x2d   :  { %1418 = vmatprep.subr.bf16.mxu0 %v1611_v33 }
  0x2f   :  { %1436 = vmatpush3.bf16.msra.mxu1 %v1610_v32 }
  0x30   :  { %1419 = vmatpush3.bf16.msra.mxu0 %v1612_v34  ;;  %1437 = vmatprep.subr.bf16.mxu1 %v1613_v35 }
  0x31   :  { %1420 = vmatprep.subr.bf16.mxu0 %v1615_v37 }
  0x33   :  { %1438 = vmatpush3.bf16.msra.mxu1 %v1614_v36 }
  0x34   :  { %1421 = vmatpush3.bf16.msra.mxu0 %v1616_v38  ;;  %1439 = vmatprep.subr.bf16.mxu1 %v1617_v39 }
  0x35   :  { %1485 = vmatprep.subr.bf16.mxu0 %v1619_v43 }
  0x37   :  { %1440 = vmatpush3.bf16.msra.mxu1 %v1618_v41  ;;  %354 = vmatmul.mubr.f32.vlgmr.msra.gmra.mrb[0].mxu0 %v54_v42 }
  0x38   :  { %1486 = vmatpush3.bf16.msra.mxu0 %v1619_v43  ;;  %1509 = vmatprep.subr.bf16.mxu1 %v1627_v0 }
  0x39   :  { %1487 = vmatprep.subr.bf16.mxu0 %v1620_v46 }
  0x3a   :  { %392 = vmatmul.mubr.f32.vlgmr.msra.gmra.mrb[0].mxu1 %v56_v45 }
  0x3b   :  { %1510 = vmatpush3.bf16.msra.mxu1 %v1627_v0 }
  0x3c   :  { %1488 = vmatpush3.bf16.msra.mxu0 %v1620_v46  ;;  %1519 = vmatprep.subr.bf16.mxu1 %v1755_v1 }
  0x3d   :  { %1489 = vmatprep.subr.bf16.mxu0 %v1621_v47 }
  0x40   :  { %1490 = vmatpush3.bf16.msra.mxu0 %v1621_v47  ;;  %v688_v47 = vld [vmem:[%s2090_s9] sm:$0xff]  ;;  %s1758_s9 = smov [#allocation5]  }
  0x41   :  { %1491 = vmatprep.subr.bf16.mxu0 %v1622_v48  ;;  %s1302_s19 = sshll.u32 %s1758_s9, 4  ;;  %s1303_s19 = int_to_ptr.vmem [resolvable:$true] %s1302_s19 }
  0x42   :  { %s1700_s20 = scalar_lea.vmem %s1303_s19, 128  ;;  %p1705_p9 = scmp.lt.s32.totalorder %s1303_s19, %s1303_s19 }
  0x43   :  { %p1701_p8 = scmp.ne.s32.totalorder %s1303_s19, %s1700_s20  ;;  %p1706_p10 = scmp.lt.s32.totalorder %s1700_s20, %s1700_s20 }
  0x44   :  { %1492 = vmatpush3.bf16.msra.mxu0 %v1622_v48 }
  0x45   :  { %1493 = vmatprep.subr.bf16.mxu0 %v1623_v49  ;;  %p1707_p11 = por %p1706_p10, %p1705_p9 }
  0x47   :  { %p1708_p12 = pnand %p1707_p11, %p1701_p8 }
  0x48   :  { %1494 = vmatpush3.bf16.msra.mxu0 %v1623_v49 }
  0x49   :  { %1495 = vmatprep.subr.bf16.mxu0 %v1624_v50 }
  0x4c   :  { %1496 = vmatpush3.bf16.msra.mxu0 %v1624_v50 }
  0x4d   :  { %1497 = vmatprep.subr.bf16.mxu0 %v1625_v51 }
  0x50   :  { %1498 = vmatpush3.bf16.msra.mxu0 %v1625_v51 }
  0x51   :  { %1499 = vmatprep.subr.bf16.mxu0 %v1626_v52 }
  0x54   :  { %1500 = vmatpush3.bf16.msra.mxu0 %v1626_v52 }
  0x55   :  { %1547 = vmatprep.subr.bf16.mxu0 %v1755_v1 }
  0x95   :  { %v417_v54 = vpop.permute.xlu1 %416  ;;  %v411_v55 = vpop.permute.xlu0 %410 }
  0x96   :  { %vm435_vm0 = vcmp.eq.s32.totalorder %v417_v54, %v408_v56  ;;  %vm433_vm3 = vcmp.eq.s32.totalorder %v411_v55, %v408_v56 }
  0x99   :  { %v420_v57 = vpop.permute.xlu1 %419  ;;  %v414_v58 = vpop.permute.xlu0 %413 }
  0x9a   :  { %vm436_vm1 = vcmp.eq.s32.totalorder %v420_v57, %v408_v56  ;;  %vm434_vm2 = vcmp.eq.s32.totalorder %v414_v58, %v408_v56 }
  0x9b   :  { %vm1376_vm4 = vmpackc.low %vm436_vm1, %vm435_vm0 }
  0x9c   :  { %vm1374_vm5 = vmpackc.low %vm434_vm2, %vm433_vm3 }
  0x9d   :  { %1501 = vmatprep.mubr.msk.bf16.mxu0 %vm1374_vm5, %v1754_v59  ;;  %v426_v60 = vpop.permute.xlu1 %425  ;;  %v423_v61 = vpop.permute.xlu0 %422 }
  0x9e   :  { %vm438_vm6 = vcmp.eq.s32.totalorder %v426_v60, %v408_v56  ;;  %vm437_vm7 = vcmp.eq.s32.totalorder %v423_v61, %v408_v56  ;;  %1502 = vmatmul.mubr.msk.bf16.vlgmr.msra.gmra.mrb[4].mxu0 %vm1376_vm4, %v1754_v59 }
  0x9f   :  { %vm1378_vm8 = vmpackc.low %vm438_vm6, %vm437_vm7  ;;  %1548 = vmatpush3.bf16.msra.mxu0 %v1901_v2 }
  0xa0   :  { %1505 = vmatprep.mubr.msk.bf16.mxu0 %vm1378_vm8, %v1754_v59  ;;  %1549 = vmatprep.subr.bf16.mxu0 %v1755_v1 }
  0xa1   :  { %v432_v62 = vpop.permute.xlu1 %431  ;;  %v429_v63 = vpop.permute.xlu0 %428 }
  0xa2   :  { %vm440_vm9 = vcmp.eq.s32.totalorder %v432_v62, %v408_v56  ;;  %vm439_vm10 = vcmp.eq.s32.totalorder %v429_v63, %v408_v56 }
  0xa3   :  { %vm1380_vm11 = vmpackc.low %vm440_vm9, %vm439_vm10  ;;  %1550 = vmatpush3.bf16.msra.mxu0 %v1909_v3 }
  0xa4   :  { %1561 = vmatprep.subr.bf16.mxu0 %v1755_v1 }
  0xa5   :  { %v1952_v43 = vpop.permute.xlu0 %762 }
  0xa6   :  { %1506 = vmatmul.mubr.msk.bf16.gmra.mrb[8].mxu0 %vm1380_vm11, %v1754_v59 }
  0xa7   :  { %1551 = vmatprep.mubr.msk.f32.mxu0 %vm1756_vm12, %v1755_v1 }
 0x10a   :  { %v1422_v5 = vpop.f32.mrb[0].mxu0 }
 0x10b   :  { %v1423_v7 = vpop.f32.mrb[1].mxu0 }
 0x10c   :  { %v1424_v9 = vadd.f32 %v1423_v7, %v1422_v5 }
 0x10d   :  { %v1441_v8 = vpop.f32.mrb[0].mxu1 }
 0x10e   :  { %v1442_v10 = vpop.f32.mrb[1].mxu1  ;;  %v356_v12 = vadd.f32 %v1424_v9, %v1325_v6 }
 0x10f   :  { %v1443_v11 = vadd.f32 %v1442_v10, %v1441_v8 }
 0x111   :  { %v394_v13 = vadd.f32 %v1443_v11, %v356_v12 }
 0x113   :  { %v397_v14 = vmax.f32 %v394_v13, 0.0 }
 0x115   :  { %398 = vst [vmem:[#allocation5] sm:$0xff] %v397_v14 }
 0x171   :  { %v1503_v15 = vpop.f32.mrb[4].mxu0 }
 0x172   :  { %v559_v16 = vpop.f32.mrb[5].mxu0 }
 0x173   :  { %v1504_v17 = vpop.f32.mrb[6].mxu0 }
 0x174   :  { %v591_v18 = vpack.c.bf16 %v1504_v17, %v1503_v15  ;;  %v562_v19 = vpop.f32.mrb[7].mxu0 }
 0x175   :  { %v590_v20 = vpack.c.bf16 %v562_v19, %v559_v16 }
 0x177   :  { %1511 = vmatprep.mubr.msk.bf16.mxu1 %vm609_vm13, %v590_v20 }
 0x178   :  { %1512 = vmatmul.mubr.msk.bf16.vlgmr.msra.gmra.mrb[4].mxu1 %vm609_vm13, %v591_v18 }
 0x179   :  { %1520 = vmatpush3.bf16.msra.mxu1 %v1901_v2  ;;  %v1507_v21 = vpop.f32.mrb[8].mxu0 }
 0x17a   :  { %v575_v22 = vpop.f32.mrb[9].mxu0  ;;  %1521 = vmatprep.subr.bf16.mxu1 %v1755_v1 }
 0x17b   :  { %v1508_v23 = vpop.f32.mrb[10].mxu0 }
 0x17c   :  { %v593_v24 = vpack.c.bf16 %v1508_v23, %v1507_v21  ;;  %v578_v25 = vpop.f32.mrb[11].mxu0 }
 0x17d   :  { %v592_v26 = vpack.c.bf16 %v578_v25, %v575_v22  ;;  %1522 = vmatpush3.bf16.msra.mxu1 %v1909_v3 }
 0x17e   :  { %1526 = vmatprep.subr.bf16.mxu1 %v1755_v1 }
 0x17f   :  { %1515 = vmatprep.mubr.msk.bf16.mxu1 %vm609_vm13, %v592_v26 }
 0x180   :  { %1516 = vmatmul.mubr.msk.bf16.gmra.mrb[8].mxu1 %vm609_vm13, %v593_v24 }
 0x181   :  { %1523 = vmatprep.mubr.msk.f32.mxu1 %vm1756_vm12, %v1755_v1 }
 0x188   :  { %1524 = vmatmul.mubr.f32.vlgmr.msra.gmra.mrb[2].mxu1 %v1755_v1 }
 0x189   :  { %1527 = vmatpush3.bf16.msra.mxu1 %v1901_v2  ;;  %1530 = vmatprep.mubr.msk.f32.mxu1 %vm1756_vm12, %v1755_v1 }
 0x18a   :  { %1528 = vmatprep.subr.bf16.mxu1 %v1755_v1 }
 0x18d   :  { %1529 = vmatpush3.bf16.msra.mxu1 %v1909_v3 }
 0x18e   :  { %1533 = vmatprep.subr.bf16.mxu1 %v1755_v1 }
 0x24b   :  { %v1513_v28 = vpop.f32.mrb[4].mxu1 }
 0x24c   :  { %v1938_v29 = vadd.f32 %v1513_v28, %v1382_v27  ;;  %v656_v30 = vpop.f32.mrb[5].mxu1 }
 0x24d   :  { %v1514_v31 = vpop.f32.mrb[6].mxu1  ;;  %v657_v48 = vadd.f32 %v1382_v27, %v656_v30 }
 0x24e   :  { %v1940_v32 = vadd.f32 %v1514_v31, %v1382_v27  ;;  %v659_v33 = vpop.f32.mrb[7].mxu1 }
 0x24f   :  { %v1942_v34 = vadd.f32 %v1382_v27, %v659_v33 }
 0x253   :  { %v1517_v35 = vpop.f32.mrb[8].mxu1 }
 0x254   :  { %v1944_v36 = vadd.f32 %v1517_v35, %v1382_v27  ;;  %v672_v37 = vpop.f32.mrb[9].mxu1 }
 0x255   :  { %v1946_v38 = vadd.f32 %v1382_v27, %v672_v37  ;;  %v1518_v39 = vpop.f32.mrb[10].mxu1 }
 0x256   :  { %v1948_v40 = vadd.f32 %v1518_v39, %v1382_v27  ;;  %v675_v41 = vpop.f32.mrb[11].mxu1 }
 0x257   :  { %v1950_v42 = vadd.f32 %v1382_v27, %v675_v41 }
 0x25b   :  { %v746_v44 = vpop.f32.mrb[2].mxu1 }
 0x25c   :  { %v1525_v45 = vpop.f32.mrb[3].mxu1  ;;  %v765_v46 = vadd.f32 %v1952_v43, %v746_v44  ;;  %v750_v49 = vadd.f32 %v746_v44, %v657_v48 }
 0x25e   :  { %767 = vrot.lane.b32.xlu1 %v765_v46, %s1751_s27  ;;  %v1390_v50 = vmul.f32 -1.442695, %v750_v49 }
 0x260   :  { %1630 = vpow2.f32 %v1390_v50 }
 0x262   :  { %690 = vperm.xlu1 %1586, %v688_v47  }
 0x26a   :  { %v1631_v51 = vpop.eup %1630 }
 0x26b   :  { %v754_v52 = vadd.f32 1.0, %v1631_v51 }
 0x26d   :  { %1632 = vrcp.f32 %v754_v52 }
 0x277   :  { %v1633_v53 = vpop.eup %1632 }
 0x278   :  { %v777_v59 = vsub.f32 1.0, %v1633_v53  ;;  %v783_v62 = vmul.f32 0.0, %v1633_v53 }
 0x2d0   :  { %v768_v54 = vpop.permute.xlu1 %767 }
 0x2d1   :  { %v770_v55 = vmul.f32 %v1633_v53, %v768_v54 }
 0x2d3   :  { %772 = vrot.lane.b32.xlu0 %v770_v55, %s1751_s27 }
 0x2e1   :  { %v1961_v61 = vpop.permute.xlu1 %690 }
 0x2e2   :  { %vm785_vm14 = vcmp.gt.s32.totalorder %v1961_v61, 0  ;;  %vm857_vm0 = vcmp.gt.s32.totalorder %v1961_v61, 1  ;;  %vm929_vm1 = vcmp.gt.s32.totalorder %v1961_v61, 2  ;;  %vm1001_vm2 = vcmp.gt.s32.totalorder %v1961_v61, 3 }
 0x2e3   :  { %vm1073_vm3 = vcmp.gt.s32.totalorder %v1961_v61, 4  ;;  %vm1145_vm4 = vcmp.gt.s32.totalorder %v1961_v61, 5  ;;  %vm1217_vm5 = vcmp.gt.s32.totalorder %v1961_v61, 6 }
 0x345   :  { %v773_v56 = vpop.permute.xlu0 %772 }
 0x346   :  { %v775_v57 = vadd.f32 %v773_v56, %v657_v48 }
 0x348   :  { %1634 = vtanh.f32 %v775_v57 }
 0x352   :  { %v1635_v58 = vpop.eup %1634 }
 0x353   :  { %779 = vrot.lane.b32.xlu0 %v1635_v58, %s1757_s18 }
 0x3c5   :  { %v780_v60 = vpop.permute.xlu0 %779 }
 0x3c6   :  { %v782_v63 = vmul.f32 %v780_v60, %v777_v59 }
 0x3c8   :  { %v784_v0 = vadd.f32 %v783_v62, %v782_v63 }
 0x3ca   :  { %v786_v4 = vsel %vm785_vm14, %v784_v0, 0.0 }
 0x3cb   :  { %788 = vrot.lane.b32.xlu1 %v786_v4, %s1757_s18 }
 0x43d   :  { %v789_v5 = vpop.permute.xlu1 %788 }
 0x43e   :  { %1531 = vmatmul.mubr.msk.f32.vlgmr.msra.gmra.mrb[12].mxu1 %vm708_vm15, %v789_v5 }
 0x43f   :  { %1534 = vmatpush3.bf16.msra.mxu1 %v1901_v2  ;;  %1537 = vmatprep.mubr.msk.f32.mxu1 %vm1756_vm12, %v1755_v1 }
 0x440   :  { %1535 = vmatprep.subr.bf16.mxu1 %v1755_v1 }
 0x443   :  { %1536 = vmatpush3.bf16.msra.mxu1 %v1909_v3 }
 0x444   :  { %1540 = vmatprep.subr.bf16.mxu1 %v1755_v1 }
 0x511   :  { %v826_v6 = vpop.f32.mrb[12].mxu1 }
 0x512   :  { %v1532_v7 = vpop.f32.mrb[13].mxu1  ;;  %v837_v8 = vadd.f32 %v826_v6, %v1952_v43  ;;  %v830_v9 = vadd.f32 %v826_v6, %v1942_v34 }
 0x514   :  { %839 = vrot.lane.b32.xlu0 %v837_v8, %s1751_s27  ;;  %v1393_v10 = vmul.f32 -1.442695, %v830_v9 }
 0x516   :  { %1636 = vpow2.f32 %v1393_v10 }
 0x520   :  { %v1637_v11 = vpop.eup %1636 }
 0x521   :  { %v834_v12 = vadd.f32 1.0, %v1637_v11 }
 0x523   :  { %1638 = vrcp.f32 %v834_v12 }
 0x52d   :  { %v1639_v13 = vpop.eup %1638 }
 0x52e   :  { %v849_v19 = vsub.f32 1.0, %v1639_v13  ;;  %v855_v21 = vmul.f32 %v1639_v13, %v786_v4 }
 0x586   :  { %v840_v14 = vpop.permute.xlu0 %839 }
 0x587   :  { %v842_v15 = vmul.f32 %v1639_v13, %v840_v14 }
 0x589   :  { %844 = vrot.lane.b32.xlu1 %v842_v15, %s1751_s27 }
 0x5fb   :  { %v845_v16 = vpop.permute.xlu1 %844 }
 0x5fc   :  { %v847_v17 = vadd.f32 %v845_v16, %v1942_v34 }
 0x5fe   :  { %1640 = vtanh.f32 %v847_v17 }
 0x608   :  { %v1641_v18 = vpop.eup %1640 }
 0x609   :  { %851 = vrot.lane.b32.xlu0 %v1641_v18, %s1757_s18 }
 0x67b   :  { %v852_v20 = vpop.permute.xlu0 %851 }
 0x67c   :  { %v854_v22 = vmul.f32 %v852_v20, %v849_v19 }
 0x67e   :  { %v856_v23 = vadd.f32 %v855_v21, %v854_v22 }
 0x680   :  { %v858_v24 = vsel %vm857_vm0, %v856_v23, %v786_v4 }
 0x681   :  { %860 = vrot.lane.b32.xlu1 %v858_v24, %s1757_s18 }
 0x6f3   :  { %v861_v25 = vpop.permute.xlu1 %860 }
 0x6f4   :  { %1538 = vmatmul.mubr.msk.f32.vlgmr.msra.gmra.mrb[14].mxu1 %vm708_vm15, %v861_v25 }
 0x6f5   :  { %1541 = vmatpush3.bf16.msra.mxu1 %v1901_v2  ;;  %1544 = vmatprep.mubr.msk.f32.mxu1 %vm1756_vm12, %v1755_v1 }
 0x6f6   :  { %1542 = vmatprep.subr.bf16.mxu1 %v1755_v1 }
 0x6f9   :  { %1543 = vmatpush3.bf16.msra.mxu1 %v1909_v3 }
 0x6fa   :  { %1554 = vmatprep.subr.bf16.mxu1 %v1755_v1 }
 0x7c7   :  { %v898_v26 = vpop.f32.mrb[14].mxu1 }
 0x7c8   :  { %v1539_v27 = vpop.f32.mrb[15].mxu1  ;;  %v909_v28 = vadd.f32 %v898_v26, %v1952_v43  ;;  %v902_v30 = vadd.f32 %v898_v26, %v1938_v29 }
 0x7ca   :  { %911 = vrot.lane.b32.xlu0 %v909_v28, %s1751_s27  ;;  %v1395_v31 = vmul.f32 -1.442695, %v902_v30 }
 0x7cc   :  { %1642 = vpow2.f32 %v1395_v31 }
 0x7d6   :  { %v1643_v33 = vpop.eup %1642 }
 0x7d7   :  { %v906_v34 = vadd.f32 1.0, %v1643_v33 }
 0x7d9   :  { %1644 = vrcp.f32 %v906_v34 }
 0x7e3   :  { %v1645_v35 = vpop.eup %1644 }
 0x7e4   :  { %v921_v46 = vsub.f32 1.0, %v1645_v35  ;;  %v927_v48 = vmul.f32 %v1645_v35, %v858_v24 }
 0x83c   :  { %v912_v37 = vpop.permute.xlu0 %911 }
 0x83d   :  { %v914_v39 = vmul.f32 %v1645_v35, %v912_v37 }
 0x83f   :  { %916 = vrot.lane.b32.xlu1 %v914_v39, %s1751_s27 }
 0x8b1   :  { %v917_v41 = vpop.permute.xlu1 %916 }
 0x8b2   :  { %v919_v44 = vadd.f32 %v917_v41, %v1938_v29 }
 0x8b4   :  { %1646 = vtanh.f32 %v919_v44 }
 0x8be   :  { %v1647_v45 = vpop.eup %1646 }
 0x8bf   :  { %923 = vrot.lane.b32.xlu0 %v1647_v45, %s1757_s18 }
 0x931   :  { %v924_v47 = vpop.permute.xlu0 %923 }
 0x932   :  { %v926_v49 = vmul.f32 %v924_v47, %v921_v46 }
 0x934   :  { %v928_v50 = vadd.f32 %v927_v48, %v926_v49 }
 0x936   :  { %v930_v51 = vsel %vm929_vm1, %v928_v50, %v858_v24 }
 0x937   :  { %932 = vrot.lane.b32.xlu1 %v930_v51, %s1757_s18 }
 0x9a9   :  { %v933_v52 = vpop.permute.xlu1 %932 }
 0x9aa   :  { %1545 = vmatmul.mubr.msk.f32.vlgmr.msra.gmra.mrb[16].mxu1 %vm708_vm15, %v933_v52 }
 0x9ab   :  { %1555 = vmatpush3.bf16.msra.mxu1 %v1901_v2  ;;  %1558 = vmatprep.mubr.msk.f32.mxu1 %vm1756_vm12, %v1755_v1 }
 0x9ac   :  { %1556 = vmatprep.subr.bf16.mxu1 %v1755_v1 }
 0x9af   :  { %1557 = vmatpush3.bf16.msra.mxu1 %v1909_v3 }
 0x9b0   :  { %1568 = vmatprep.subr.bf16.mxu1 %v1755_v1 }
 0xa7d   :  { %v970_v29 = vpop.f32.mrb[16].mxu1 }
 0xa7e   :  { %v1546_v53 = vpop.f32.mrb[17].mxu1  ;;  %v981_v54 = vadd.f32 %v970_v29, %v1952_v43  ;;  %v974_v55 = vadd.f32 %v970_v29, %v1940_v32 }
 0xa80   :  { %983 = vrot.lane.b32.xlu0 %v981_v54, %s1751_s27  ;;  %v1397_v56 = vmul.f32 -1.442695, %v974_v55 }
 0xa82   :  { %1648 = vpow2.f32 %v1397_v56 }
 0xa8c   :  { %v1649_v57 = vpop.eup %1648 }
 0xa8d   :  { %v978_v58 = vadd.f32 1.0, %v1649_v57 }
 0xa8f   :  { %1650 = vrcp.f32 %v978_v58 }
 0xa99   :  { %v1651_v59 = vpop.eup %1650 }
 0xa9a   :  { %v993_v5 = vsub.f32 1.0, %v1651_v59  ;;  %v999_v7 = vmul.f32 %v1651_v59, %v930_v51 }
 0xaf2   :  { %v984_v60 = vpop.permute.xlu0 %983 }
 0xaf3   :  { %v986_v62 = vmul.f32 %v1651_v59, %v984_v60 }
 0xaf5   :  { %988 = vrot.lane.b32.xlu1 %v986_v62, %s1751_s27 }
 0xb67   :  { %v989_v63 = vpop.permute.xlu1 %988 }
 0xb68   :  { %v991_v0 = vadd.f32 %v989_v63, %v1940_v32 }
 0xb6a   :  { %1652 = vtanh.f32 %v991_v0 }
 0xb74   :  { %v1653_v4 = vpop.eup %1652 }
 0xb75   :  { %995 = vrot.lane.b32.xlu0 %v1653_v4, %s1757_s18 }
 0xbe7   :  { %v996_v6 = vpop.permute.xlu0 %995 }
 0xbe8   :  { %v998_v8 = vmul.f32 %v996_v6, %v993_v5 }
 0xbea   :  { %v1000_v9 = vadd.f32 %v999_v7, %v998_v8 }
 0xbec   :  { %v1002_v10 = vsel %vm1001_vm2, %v1000_v9, %v930_v51 }
 0xbed   :  { %1004 = vrot.lane.b32.xlu1 %v1002_v10, %s1757_s18 }
 0xc5f   :  { %v1005_v11 = vpop.permute.xlu1 %1004 }
 0xc60   :  { %1552 = vmatmul.mubr.msk.f32.vlgmr.msra.gmra.mrb[2].mxu0 %vm708_vm15, %v1005_v11 }
 0xc61   :  { %1562 = vmatpush3.bf16.msra.mxu0 %v1901_v2  ;;  %1565 = vmatprep.mubr.msk.f32.mxu0 %vm1756_vm12, %v1755_v1 }
 0xc62   :  { %1563 = vmatprep.subr.bf16.mxu0 %v1755_v1 }
 0xc65   :  { %1564 = vmatpush3.bf16.msra.mxu0 %v1909_v3 }
 0xd33   :  { %v1042_v32 = vpop.f32.mrb[2].mxu0 }
 0xd34   :  { %v1553_v12 = vpop.f32.mrb[3].mxu0  ;;  %v1053_v13 = vadd.f32 %v1042_v32, %v1952_v43  ;;  %v1046_v14 = vadd.f32 %v1042_v32, %v1946_v38 }
 0xd36   :  { %1055 = vrot.lane.b32.xlu0 %v1053_v13, %s1751_s27  ;;  %v1399_v15 = vmul.f32 -1.442695, %v1046_v14 }
 0xd38   :  { %1654 = vpow2.f32 %v1399_v15 }
 0xd42   :  { %v1655_v16 = vpop.eup %1654 }
 0xd43   :  { %v1050_v17 = vadd.f32 1.0, %v1655_v16 }
 0xd45   :  { %1656 = vrcp.f32 %v1050_v17 }
 0xd4f   :  { %v1657_v18 = vpop.eup %1656 }
 0xd50   :  { %v1065_v24 = vsub.f32 1.0, %v1657_v18  ;;  %v1071_v26 = vmul.f32 %v1657_v18, %v1002_v10 }
 0xda8   :  { %v1056_v19 = vpop.permute.xlu0 %1055 }
 0xda9   :  { %v1058_v20 = vmul.f32 %v1657_v18, %v1056_v19 }
 0xdab   :  { %1060 = vrot.lane.b32.xlu1 %v1058_v20, %s1751_s27 }
 0xe1d   :  { %v1061_v21 = vpop.permute.xlu1 %1060 }
 0xe1e   :  { %v1063_v22 = vadd.f32 %v1061_v21, %v1946_v38 }
 0xe20   :  { %1658 = vtanh.f32 %v1063_v22 }
 0xe2a   :  { %v1659_v23 = vpop.eup %1658 }
 0xe2b   :  { %1067 = vrot.lane.b32.xlu0 %v1659_v23, %s1757_s18 }
 0xe9d   :  { %v1068_v25 = vpop.permute.xlu0 %1067 }
 0xe9e   :  { %v1070_v27 = vmul.f32 %v1068_v25, %v1065_v24 }
 0xea0   :  { %v1072_v28 = vadd.f32 %v1071_v26, %v1070_v27 }
 0xea2   :  { %v1074_v30 = vsel %vm1073_vm3, %v1072_v28, %v1002_v10 }
 0xea3   :  { %1076 = vrot.lane.b32.xlu1 %v1074_v30, %s1757_s18 }
 0xf15   :  { %v1077_v31 = vpop.permute.xlu1 %1076 }
 0xf16   :  { %1559 = vmatmul.mubr.msk.f32.vlgmr.msra.gmra.mrb[18].mxu1 %vm708_vm15, %v1077_v31 }
 0xf17   :  { %1569 = vmatpush3.bf16.msra.mxu1 %v1901_v2  ;;  %1572 = vmatprep.mubr.msk.f32.mxu1 %vm1756_vm12, %v1755_v1 }
 0xf18   :  { %1570 = vmatprep.subr.bf16.mxu1 %v1755_v1 }
 0xf1b   :  { %1571 = vmatpush3.bf16.msra.mxu1 %v1909_v3 }
 0xfe9   :  { %v1114_v38 = vpop.f32.mrb[18].mxu1 }
 0xfea   :  { %v1560_v33 = vpop.f32.mrb[19].mxu1  ;;  %v1125_v34 = vadd.f32 %v1114_v38, %v1952_v43  ;;  %v1118_v35 = vadd.f32 %v1114_v38, %v1950_v42 }
 0xfec   :  { %1127 = vrot.lane.b32.xlu0 %v1125_v34, %s1751_s27  ;;  %v1401_v37 = vmul.f32 -1.442695, %v1118_v35 }
 0xfee   :  { %1660 = vpow2.f32 %v1401_v37 }
 0xff8   :  { %v1661_v39 = vpop.eup %1660 }
 0xff9   :  { %v1122_v41 = vadd.f32 1.0, %v1661_v39 }
 0xffb   :  { %1662 = vrcp.f32 %v1122_v41 }
0x1005   :  { %v1663_v2 = vpop.eup %1662 }
0x1006   :  { %v1137_v47 = vsub.f32 1.0, %v1663_v2  ;;  %v1143_v49 = vmul.f32 %v1663_v2, %v1074_v30 }
0x105e   :  { %v1128_v44 = vpop.permute.xlu0 %1127 }
0x105f   :  { %v1130_v45 = vmul.f32 %v1663_v2, %v1128_v44 }
0x1061   :  { %1132 = vrot.lane.b32.xlu1 %v1130_v45, %s1751_s27 }
0x10d3   :  { %v1133_v1 = vpop.permute.xlu1 %1132 }
0x10d4   :  { %v1135_v3 = vadd.f32 %v1133_v1, %v1950_v42 }
0x10d6   :  { %1664 = vtanh.f32 %v1135_v3 }
0x10e0   :  { %v1665_v46 = vpop.eup %1664 }
0x10e1   :  { %1139 = vrot.lane.b32.xlu0 %v1665_v46, %s1757_s18 }
0x1153   :  { %v1140_v48 = vpop.permute.xlu0 %1139 }
0x1154   :  { %v1142_v50 = vmul.f32 %v1140_v48, %v1137_v47 }
0x1156   :  { %v1144_v51 = vadd.f32 %v1143_v49, %v1142_v50 }
0x1158   :  { %v1146_v52 = vsel %vm1145_vm4, %v1144_v51, %v1074_v30 }
0x1159   :  { %1148 = vrot.lane.b32.xlu1 %v1146_v52, %s1757_s18 }
0x11cb   :  { %v1149_v29 = vpop.permute.xlu1 %1148 }
0x11cc   :  { %1566 = vmatmul.mubr.msk.f32.vlgmr.msra.gmra.mrb[12].mxu0 %vm708_vm15, %v1149_v29 }
0x129f   :  { %v1186_v53 = vpop.f32.mrb[12].mxu0 }
0x12a0   :  { %v1567_v54 = vpop.f32.mrb[13].mxu0  ;;  %v1197_v42 = vadd.f32 %v1186_v53, %v1952_v43  ;;  %v1190_v55 = vadd.f32 %v1186_v53, %v1944_v36 }
0x12a2   :  { %1199 = vrot.lane.b32.xlu0 %v1197_v42, %s1751_s27  ;;  %v1403_v56 = vmul.f32 -1.442695, %v1190_v55 }
0x12a4   :  { %1666 = vpow2.f32 %v1403_v56 }
0x12ae   :  { %v1667_v57 = vpop.eup %1666 }
0x12af   :  { %v1194_v58 = vadd.f32 1.0, %v1667_v57 }
0x12b1   :  { %1668 = vrcp.f32 %v1194_v58 }
0x12bb   :  { %v1669_v59 = vpop.eup %1668 }
0x12bc   :  { %v1209_v5 = vsub.f32 1.0, %v1669_v59  ;;  %v1215_v7 = vmul.f32 %v1669_v59, %v1146_v52 }
0x1314   :  { %v1200_v60 = vpop.permute.xlu0 %1199 }
0x1315   :  { %v1202_v62 = vmul.f32 %v1669_v59, %v1200_v60 }
0x1317   :  { %1204 = vrot.lane.b32.xlu1 %v1202_v62, %s1751_s27 }
0x1389   :  { %v1205_v63 = vpop.permute.xlu1 %1204 }
0x138a   :  { %v1207_v0 = vadd.f32 %v1205_v63, %v1944_v36 }
0x138c   :  { %1670 = vtanh.f32 %v1207_v0 }
0x1396   :  { %v1671_v4 = vpop.eup %1670 }
0x1397   :  { %1211 = vrot.lane.b32.xlu0 %v1671_v4, %s1757_s18 }
0x1409   :  { %v1212_v6 = vpop.permute.xlu0 %1211 }
0x140a   :  { %v1214_v8 = vmul.f32 %v1212_v6, %v1209_v5 }
0x140c   :  { %v1216_v9 = vadd.f32 %v1215_v7, %v1214_v8 }
0x140e   :  { %v1218_v10 = vsel %vm1217_vm5, %v1216_v9, %v1146_v52 }
0x140f   :  { %1220 = vrot.lane.b32.xlu1 %v1218_v10, %s1757_s18 }
0x1481   :  { %v1221_v11 = vpop.permute.xlu1 %1220 }
0x1482   :  { %1573 = vmatmul.mubr.msk.f32.vlgmr.msra.gmra.mrb[20].mxu1 %vm708_vm15, %v1221_v11 }
0x1555   :  { %v1258_v32 = vpop.f32.mrb[20].mxu1 }
0x1556   :  { %v1574_v12 = vpop.f32.mrb[21].mxu1  ;;  %v1269_v36 = vadd.f32 %v1258_v32, %v1952_v43  ;;  %v1262_v13 = vadd.f32 %v1258_v32, %v1948_v40 }
0x1558   :  { %1271 = vrot.lane.b32.xlu0 %v1269_v36, %s1751_s27  ;;  %v1405_v14 = vmul.f32 -1.442695, %v1262_v13 }
0x155a   :  { %1672 = vpow2.f32 %v1405_v14 }
0x1564   :  { %v1673_v15 = vpop.eup %1672 }
0x1565   :  { %v1266_v16 = vadd.f32 1.0, %v1673_v15 }
0x1567   :  { %1674 = vrcp.f32 %v1266_v16 }
0x1571   :  { %v1675_v17 = vpop.eup %1674 }
0x15ca   :  { %v1272_v18 = vpop.permute.xlu0 %1271 }
0x15cb   :  { %v1274_v19 = vmul.f32 %v1675_v17, %v1272_v18 }
0x15cd   :  { %1276 = vrot.lane.b32.xlu1 %v1274_v19, %s1751_s27 }
0x163f   :  { %v1277_v20 = vpop.permute.xlu1 %1276 }
0x1640   :  { %v1279_v21 = vadd.f32 %v1277_v20, %v1948_v40 }
0x1642   :  { %1676 = vtanh.f32 %v1279_v21 }
0x164c   :  { %v1677_v22 = vpop.eup %1676 }
0x164d   :  { %1283 = vrot.lane.b32.xlu0 %v1677_v22, %s1757_s18 }
0x164e   :  { %1711 = shalt.err (!%p1708_p12)
}
0x164f   :  { %s1712_s27 = scalar_lea.hbm %s2091_s10, 128 }
0x1650   :  { %p1713_p13 = scmp.ne.s32.totalorder %s2091_s10, %s1712_s27  ;;  %p1716_p0 = scmp.lt.u32.totalorder %s1712_s27, %s2091_s10 }
0x1652   :  { %p1718_p1 = pnand %p1716_p0, %p1713_p13 }
0x1654   :  { %1721 = shalt.err (!%p1718_p1)
}
0x1655   :  { %1305 = dma.vmem_to_hbm [thread:$0]  %s1303_s19, 128, %s2091_s10, [#allocation4]   ;;  %v1281_v40 = vsub.f32 1.0, %v1675_v17  ;;  %v1287_v23 = vmul.f32 %v1675_v17, %v1218_v10  ;;  %vm1289_vm6 = vcmp.gt.s32.totalorder %v1961_v61, 7 }
0x1656   :  { %s1759_s28 = smov [#allocation6]  }
0x1657   :  { %s1312_s29 = sshll.u32 %s1759_s28, 4  ;;  %s1313_s29 = int_to_ptr.vmem [resolvable:$true] %s1312_s29 }
0x1658   :  { %s1722_s4 = scalar_lea.vmem %s1313_s29, 128  ;;  %p1727_p3 = scmp.lt.s32.totalorder %s1313_s29, %s1313_s29 }
0x1659   :  { %p1723_p2 = scmp.ne.s32.totalorder %s1313_s29, %s1722_s4  ;;  %p1728_p4 = scmp.lt.s32.totalorder %s1722_s4, %s1722_s4 }
0x165b   :  { %p1729_p5 = por %p1728_p4, %p1727_p3 }
0x165d   :  { %p1730_p6 = pnand %p1729_p5, %p1723_p2 }
0x16bf   :  { %v1284_v43 = vpop.permute.xlu0 %1283 }
0x16c0   :  { %v1286_v24 = vmul.f32 %v1284_v43, %v1281_v40 }
0x16c2   :  { %v1288_v25 = vadd.f32 %v1287_v23, %v1286_v24 }
0x16c4   :  { %v1290_v26 = vsel %vm1289_vm6, %v1288_v25, %v1218_v10 }
0x16c5   :  { %1292 = vrot.lane.b32.xlu1 %v1290_v26, %s1757_s18 }
0x1737   :  { %v1293_v27 = vpop.permute.xlu1 %1292 }
0x1738   :  { %1295 = vst.msk [vmem:[#allocation6] sm:$0xff] %vm708_vm15, %v1293_v27 }
0x1739   :  { %1733 = shalt.err (!%p1730_p6)
}
0x173a   :  { %s1734_s12 = scalar_lea.hbm %s2092_s11, 128 }
0x173b   :  { %p1735_p7 = scmp.ne.s32.totalorder %s2092_s11, %s1734_s12  ;;  %p1738_p8 = scmp.lt.u32.totalorder %s1734_s12, %s2092_s11 }
0x173d   :  { %p1740_p9 = pnand %p1738_p8, %p1735_p7 }
0x173f   :  { %1743 = shalt.err (!%p1740_p9)
}
0x1740   :  { %1315 = dma.vmem_to_hbm [thread:$0]  %s1313_s29, 128, %s2092_s11, [#allocation7]  }
0x1741   :  { %1746 = dma.done.wait [#allocation4], 128  }
0x1742   :  { %1747 = vsyncadd [#allocation4], 4294967168 }
0x1743   :  { %1748 = dma.done.wait [#allocation7], 128  }
0x1744   :  { %1749 = vsyncadd [#allocation7], 4294967168 }
0x1745   :  { %1322 = vsyncpa [#allocation3], 1 }
0x1746   :  { %1323 = vsyncpa [#allocation4], 1 }
0x1747   :  { %1324 = vsyncpa [#allocation7], 1 }

</bundles_post_ra>
